<compile_context>
chip_gen: v7x
topology: tpu7x:2x2x1
jax: 0.10.0
libtpu: 0.0.40
codegen_flags: <defaults>
</compile_context>

<pallas_src>
import jax
import jax.numpy as jnp
from jax.experimental import pallas as pl
from jax.experimental.pallas import tpu as pltpu


_LANE_CHOICES = (2048, 1024, 512, 256, 128)
_SUBLANE = {4: 8, 2: 16, 1: 32}        # itemsize -> min sublane tile
_BLOCK_BYTES = 2 << 20                 # ~2 MiB per array per block (v7x-safe)
_VMEM_LIMIT_BYTES = 48 << 20           # raised scoped-VMEM budget (< physical on v5e/v6e/v7x)
_MIN_ROW_BLOCKS = 2                    # keep >= 2 blocks on the "parallel" axis (v7x megacore)


def _row_tiling(rows, lanes, itemsize):
    """Pick block_rows (multiple of the dtype sublane tile, ~_BLOCK_BYTES/array,
    and small enough to leave >= _MIN_ROW_BLOCKS blocks) and grid_rows."""
    sub = _SUBLANE.get(itemsize, 8)
    if rows <= sub:
        block_rows = rows                          # block == full row extent (always legal)
    else:
        block_rows = max(sub, (_BLOCK_BYTES // (lanes * itemsize)) // sub * sub)
        if pl.cdiv(rows, block_rows) < _MIN_ROW_BLOCKS:
            block_rows = max(sub, pl.cdiv(pl.cdiv(rows, _MIN_ROW_BLOCKS), sub) * sub)
    return block_rows, pl.cdiv(rows, block_rows)


def _slab_layout(total, itemsize):
    """Lane-dense (rows, lanes) layout for `total` elements.

    Returns (lanes, rows, pad_elems, block_rows, grid_rows).  No row padding is
    ever introduced; Pallas handles the partial boundary row block, so kernel
    outputs are produced at exactly (rows, lanes)."""
    sub = _SUBLANE.get(itemsize, 8)
    lanes = None
    narrowest = None
    for w in _LANE_CHOICES:                        # widest -> narrowest
        if total % w == 0:
            narrowest = w
            if lanes is None and total // w >= _MIN_ROW_BLOCKS * sub:
                lanes = w                          # widest lanes that still allow >= 2 row blocks
    if lanes is None:
        lanes = narrowest if narrowest is not None else 128
    pad_elems = (-total) % lanes
    rows = (total + pad_elems) // lanes
    block_rows, grid_rows = _row_tiling(rows, lanes, itemsize)
    return lanes, rows, pad_elems, block_rows, grid_rows


def _to_slab(x, lanes, pad_elems):
    flat = x.reshape(-1)
    if pad_elems:
        flat = jnp.pad(flat, (0, pad_elems))
    return flat.reshape(-1, lanes)


def _from_slab(slab, total, shape):
    flat = slab.reshape(-1)
    if flat.size != total:
        flat = flat[:total]
    return flat.reshape(shape)


# -----------------------------------------------------------------------------
# Single-step LIF (matches LIF.forward(cur, mem) exactly)
# -----------------------------------------------------------------------------
def _make_lif_step_kernel(beta, threshold):
    beta = float(beta)
    threshold = float(threshold)

    def kernel(cur_ref, mem_ref, spk_ref, mem_out_ref):
        cur = cur_ref[...]
        mem = mem_ref[...]
        cond = (cur - threshold) > 0.0                          # Heaviside, strict >
        spk_ref[...] = cond.astype(spk_ref.dtype)
        # reset-by-subtraction; jnp.where(cond, thr, 0) == spk * thr exactly
        mem_out_ref[...] = (beta * mem + cur
                            - jnp.where(cond, threshold, 0.0).astype(cur.dtype))

    return kernel


def lif_forward_slab(cur_slab, mem_slab, beta, threshold=1.0, spike_dtype=None):
    """One LIF step directly on (rows, lanes) slabs (lanes % 128 == 0).
    Keeping membrane state in slab form across steps avoids all wrapper
    reshape/pad HBM passes.  Returns (spk_slab, new_mem_slab)."""
    assert cur_slab.shape == mem_slab.shape and cur_slab.dtype == mem_slab.dtype
    rows, lanes = cur_slab.shape
    dtype = cur_slab.dtype
    spike_dtype = dtype if spike_dtype is None else spike_dtype
    itemsize = jnp.dtype(dtype).itemsize
    block_rows, grid_rows = _row_tiling(rows, lanes, itemsize)

    return pl.pallas_call(
        _make_lif_step_kernel(beta, threshold),
        out_shape=(
            jax.ShapeDtypeStruct((rows, lanes), spike_dtype),
            jax.ShapeDtypeStruct((rows, lanes), dtype),
        ),
        grid_spec=pltpu.PrefetchScalarGridSpec(
            num_scalar_prefetch=0,
            grid=(grid_rows,),
            in_specs=[
                pl.BlockSpec((block_rows, lanes), lambda i: (i, 0)),   # cur
                pl.BlockSpec((block_rows, lanes), lambda i: (i, 0)),   # mem
            ],
            out_specs=[
                pl.BlockSpec((block_rows, lanes), lambda i: (i, 0)),   # spk
                pl.BlockSpec((block_rows, lanes), lambda i: (i, 0)),   # mem_out
            ],
        ),
        compiler_params=pltpu.CompilerParams(
            dimension_semantics=("parallel",),
            vmem_limit_bytes=_VMEM_LIMIT_BYTES),
        input_output_aliases={1: 1},   # membrane slab updated in place
    )(cur_slab, mem_slab)


def lif_forward(cur, mem, beta, threshold=1.0):
    """One LIF step on arbitrary-shape tensors (e.g. NCHW).  Returns (spk, new_mem)."""
    assert cur.shape == mem.shape and cur.dtype == mem.dtype
    shape, total = cur.shape, cur.size
    itemsize = jnp.dtype(cur.dtype).itemsize
    lanes, _, pad_e, _, _ = _slab_layout(total, itemsize)
    spk2d, mem2d = lif_forward_slab(_to_slab(cur, lanes, pad_e),
                                    _to_slab(mem, lanes, pad_e),
                                    beta, threshold)
    return _from_slab(spk2d, total, shape), _from_slab(mem2d, total, shape)


# -----------------------------------------------------------------------------
# Fused multi-timestep LIF: T sequential applications of LIF.forward in one
# pallas_call.  Grid = (row_tiles, T); the membrane lives in a VMEM-resident
# output block carried across the inner ("arbitrary") time axis.
# -----------------------------------------------------------------------------
def _make_lif_seq_kernel(beta, threshold):
    beta = float(beta)
    threshold = float(threshold)

    def kernel(cur_ref, mem0_ref, spk_ref, mem_ref):
        # cur_ref / spk_ref : (1, block_rows, lanes) for timestep t
        # mem_ref           : (block_rows, lanes), resident across the time axis
        @pl.when(pl.program_id(1) == 0)
        def _():
            mem_ref[...] = mem0_ref[...]

        cur = cur_ref[0]
        mem = mem_ref[...]
        cond = (cur - threshold) > 0.0
        spk_ref[0] = cond.astype(spk_ref.dtype)
        mem_ref[...] = (beta * mem + cur
                        - jnp.where(cond, threshold, 0.0).astype(cur.dtype))

    return kernel


def lif_forward_sequence(cur_seq, mem0, beta, threshold=1.0, spike_dtype=None):
    """LIF over T timesteps in a single kernel launch.
    cur_seq: (T, *step_shape); mem0: step_shape.  Returns (spk_seq, final_mem)."""
    T = cur_seq.shape[0]
    step_shape = cur_seq.shape[1:]
    assert step_shape == mem0.shape and cur_seq.dtype == mem0.dtype
    dtype, total = cur_seq.dtype, mem0.size
    spike_dtype = dtype if spike_dtype is None else spike_dtype
    itemsize = jnp.dtype(dtype).itemsize
    lanes, rows, pad_e, block_rows, grid_rows = _slab_layout(total, itemsize)

    flat = cur_seq.reshape(T, -1)
    if pad_e:
        flat = jnp.pad(flat, ((0, 0), (0, pad_e)))
    cur3d = flat.reshape(T, rows, lanes)
    mem2d = _to_slab(mem0, lanes, pad_e)

    spk3d, memf2d = pl.pallas_call(
        _make_lif_seq_kernel(beta, threshold),
        out_shape=(
            jax.ShapeDtypeStruct((T, rows, lanes), spike_dtype),
            jax.ShapeDtypeStruct((rows, lanes), dtype),
        ),
        grid_spec=pltpu.PrefetchScalarGridSpec(
            num_scalar_prefetch=0,
            grid=(grid_rows, T),                                    # time innermost (carry)
            in_specs=[
                pl.BlockSpec((1, block_rows, lanes), lambda i, t: (t, i, 0)),  # cur_seq
                pl.BlockSpec((block_rows, lanes), lambda i, t: (i, 0)),        # mem0
            ],
            out_specs=[
                pl.BlockSpec((1, block_rows, lanes), lambda i, t: (t, i, 0)),  # spk_seq
                pl.BlockSpec((block_rows, lanes), lambda i, t: (i, 0)),        # final mem
            ],
        ),
        compiler_params=pltpu.CompilerParams(
            dimension_semantics=("parallel", "arbitrary"),
            vmem_limit_bytes=_VMEM_LIMIT_BYTES),
    )(cur3d, mem2d)

    spk_flat = spk3d.reshape(T, -1)
    if spk_flat.shape[1] != total:      # only when total % 128 != 0 (element padding)
        spk_flat = spk_flat[:, :total]
    spk_seq = spk_flat.reshape((T,) + step_shape)
    mem_final = _from_slab(memf2d, total, step_shape)
    return spk_seq, mem_final


if __name__ == "__main__":
    key = jax.random.PRNGKey(0)
    k1, k2, k3 = jax.random.split(key, 3)

    shape = (2, 4, 16, 16)          # NCHW, matches the PyTorch module's usage
    beta, threshold = 0.9, 1.0

    cur = jax.random.normal(k1, shape, dtype=jnp.float32) * 2.0
    mem = jax.random.normal(k2, shape, dtype=jnp.float32)

    # --- single-step forward (exact module semantics) ---
    spk, new_mem = lif_forward(cur, mem, beta, threshold)
    spk = jax.block_until_ready(spk)
    new_mem = jax.block_until_ready(new_mem)

    spk_ref = ((cur - threshold) > 0.0).astype(jnp.float32)
    mem_ref = beta * mem + cur - spk_ref * threshold
    assert jnp.array_equal(spk, spk_ref), "single-step spike mismatch"
    assert jnp.allclose(new_mem, mem_ref, atol=1e-6), "single-step membrane mismatch"

    # --- fused T-step forward (one pallas_call, membrane carried in VMEM) ---
    T = 8
    cur_seq = jax.random.normal(k3, (T,) + shape, dtype=jnp.float32) * 2.0
    spk_seq, mem_final = lif_forward_sequence(cur_seq, mem, beta, threshold)
    spk_seq = jax.block_until_ready(spk_seq)
    mem_final = jax.block_until_ready(mem_final)

    m = mem
    spk_list = []
    for t in range(T):
        s = ((cur_seq[t] - threshold) > 0.0).astype(jnp.float32)
        m = beta * m + cur_seq[t] - s * threshold
        spk_list.append(s)
    spk_seq_ref = jnp.stack(spk_list)
    assert jnp.array_equal(spk_seq, spk_seq_ref), "sequence spike mismatch"
    assert jnp.allclose(mem_final, m, atol=1e-5), "sequence membrane mismatch"

    print("KERNEL_OK")
</pallas_src>

<mosaic_0001>
module attributes {stable_mosaic.version = 11 : i64} {
  func.func @kernel(%arg0: i32, %arg1: memref<8x128xf32, #tpu.memory_space<vmem>>, %arg2: memref<8x128xf32, #tpu.memory_space<vmem>>, %arg3: memref<8x128xf32, #tpu.memory_space<vmem>>, %arg4: memref<8x128xf32, #tpu.memory_space<vmem>>) attributes {dimension_semantics = [#tpu.dimension_semantics<parallel>], iteration_bounds = array<i64: 2>, scalar_prefetch = 0 : i64, scratch_operands = 0 : i64, tpu.core_type = #tpu.core_type<tc>, window_params = [{transform_indices = @transform_0, window_bounds = array<i64: 8, 128>}, {transform_indices = @transform_1, window_bounds = array<i64: 8, 128>}, {transform_indices = @transform_2, window_bounds = array<i64: 8, 128>}, {transform_indices = @transform_3, window_bounds = array<i64: 8, 128>}]} {
    %c0 = arith.constant 0 : index
    %c0_0 = arith.constant 0 : index
    %0 = vector.load %arg1[%c0, %c0_0] : memref<8x128xf32, #tpu.memory_space<vmem>>, vector<8x128xf32>
    %c0_1 = arith.constant 0 : index
    %c0_2 = arith.constant 0 : index
    %1 = vector.load %arg2[%c0_1, %c0_2] : memref<8x128xf32, #tpu.memory_space<vmem>>, vector<8x128xf32>
    %cst = arith.constant 1.000000e+00 : f32
    %2 = vector.broadcast %cst : f32 to vector<8x128xf32>
    %3 = arith.subf %0, %2 : vector<8x128xf32>
    %cst_3 = arith.constant 0.000000e+00 : f32
    %4 = vector.broadcast %cst_3 : f32 to vector<8x128xf32>
    %5 = arith.cmpf ogt, %3, %4 : vector<8x128xf32>
    %6 = arith.extui %5 : vector<8x128xi1> to vector<8x128xi32>
    %7 = arith.sitofp %6 : vector<8x128xi32> to vector<8x128xf32>
    %c0_4 = arith.constant 0 : index
    %c0_5 = arith.constant 0 : index
    %8 = vector.load %arg3[%c0_4, %c0_5] : memref<8x128xf32, #tpu.memory_space<vmem>>, vector<8x128xf32>
    tpu.vector_store %arg3[%c0_4, %c0_5], %7 {strides = array<i32>} : memref<8x128xf32, #tpu.memory_space<vmem>>, vector<8x128xf32>,
    %cst_6 = arith.constant 0.899999976 : f32
    %9 = vector.broadcast %cst_6 : f32 to vector<8x128xf32>
    %10 = arith.mulf %9, %1 : vector<8x128xf32>
    %11 = arith.addf %10, %0 : vector<8x128xf32>
    %cst_7 = arith.constant 1.000000e+00 : f32
    %cst_8 = arith.constant 0.000000e+00 : f32
    %12 = vector.broadcast %cst_7 : f32 to vector<8x128xf32>
    %13 = vector.broadcast %cst_8 : f32 to vector<8x128xf32>
    %14 = arith.select %5, %12, %13 : vector<8x128xi1>, vector<8x128xf32>
    %15 = arith.subf %11, %14 : vector<8x128xf32>
    %c0_9 = arith.constant 0 : index
    %c0_10 = arith.constant 0 : index
    %16 = vector.load %arg4[%c0_9, %c0_10] : memref<8x128xf32, #tpu.memory_space<vmem>>, vector<8x128xf32>
    tpu.vector_store %arg4[%c0_9, %c0_10], %15 {strides = array<i32>} : memref<8x128xf32, #tpu.memory_space<vmem>>, vector<8x128xf32>,
    return
  }
  func.func @transform_0(%arg0: i32) -> (i32, i32) {
    %c0_i32 = arith.constant 0 : i32
    %c0_i32_0 = arith.constant 0 : i32
    return %arg0, %c0_i32 : i32, i32
  }
  func.func @transform_1(%arg0: i32) -> (i32, i32) {
    %c0_i32 = arith.constant 0 : i32
    %c0_i32_0 = arith.constant 0 : i32
    return %arg0, %c0_i32 : i32, i32
  }
  func.func @transform_2(%arg0: i32) -> (i32, i32) {
    %c0_i32 = arith.constant 0 : i32
    %c0_i32_0 = arith.constant 0 : i32
    return %arg0, %c0_i32 : i32, i32
  }
  func.func @transform_3(%arg0: i32) -> (i32, i32) {
    %c0_i32 = arith.constant 0 : i32
    %c0_i32_0 = arith.constant 0 : i32
    return %arg0, %c0_i32 : i32, i32
  }
}

</mosaic_0001>

<bundles_post_ra>
// kernel: tpu_custom_call.1
= control target key start
LH: loop header
LB: loop body
LE: loop exit
PB: predicated region body
PF: predicated region fallthrough
CT: control target
= control target key end

     0   :  { %9 = vsyncpa [#allocation3], 0  ;;  %s800_s0 = inlined_call_operand.vmem [shape: f32[16,128], index: 0, kind: input, shape index: {}]   ;;  %s801_s1 = inlined_call_operand.hbm [shape: f32[16,128], index: 1, kind: input, shape index: {}, may-alias: {1,3}]   ;;  %s802_s2 = inlined_call_operand.hbm [shape: f32[16,128], index: 2, kind: output, shape index: {0}]   ;;  %s803_s3 = inlined_call_operand.hbm [shape: f32[16,128], index: 3, kind: output, shape index: {1}, may-alias: {1,3}]  }
   0x1   :  { %11 = vsyncpa [#allocation3 + $0x1], 0 }
   0x2   :  { %12 = vsyncpa [#allocation4], 0 }
   0x3   :  { %14 = vsyncpa [#allocation4 + $0x1], 0 }
   0x4   :  { %15 = vsyncpa [#allocation7], 0 }
   0x5   :  { %17 = vsyncpa [#allocation7 + $0x1], 0  ;;  %s596_s12 = smov 0   ;;  %s598_s13 = smov 0  }
   0x6   :  { %s600_s14 = smov 0   ;;  %s602_s15 = smov 0  }
   0x7 LB: > { %s617_s16 = sadd.s32 4294967295, %s570_s15   ;;  %s372_s17 = sadd.s32 4294967294, %s570_s15   ;;  %s570_s15 = sphi %s602_s15, %s818_s15   ;;  %s566_s14 = sphi %s600_s14, %s817_s14   ;;  %s562_s13 = sphi %s598_s13, %s816_s13   ;;  %s558_s12 = sphi %s596_s12, %s815_s12  }
   0x8   : > { %s621_s18 = sadd.s32 1, %s570_s15   ;;  %s56_s19 = sadd.s32 1, %s566_s14 }
   0x9   : > { %s53_s20 = ssub.s32 %s570_s15, %s621_s18  ;;  %p63_p0 = scmp.ne.s32.totalorder %s566_s14, %s562_s13 }
   0xa   : > { %p54_p1 = scmp.eq.s32.totalorder %s53_s20, 0  ;;  %p64_p2 = scmp.eq.s32.totalorder %s570_s15, 0 }
   0xb   : > { %p69_p3 = scmp.ne.s32.totalorder %s562_s13, %s558_s12  ;;  %p70_p4 = scmp.eq.s32.totalorder %s617_s16, 0 }
   0xc   : > { %s633_s21 = scalar_select %p54_p1, %s566_s14, %s56_s19  }
   0xd   : > { %p635_p5 = por %p64_p2, %p63_p0  ;;  %p639_p6 = por %p70_p4, %p69_p3 }
   0xe   : > { %p93_p7 = scmp.eq.s32.totalorder %s617_s16, 1  ;;  %p99_p8 = scmp.eq.s32.totalorder %s372_s17, 1 }
   0xf   : > { %p407_p10 = scmp.lt.s32.totalorder %s570_s15, 2  ;;  %s152_s26 = sand.u32 1, %s566_s14  }
  0x10   : > { %p646_p11 = por %p93_p7, %p63_p0  ;;  %p650_p12 = por %p99_p8, %p69_p3 }
  0x11   : > { %s376_s27 = sshll.u32 %s570_s15, 7  ;;  %s375_s28 = sshll.u32 %s152_s26, 3 }
  0x12   : > { %s807_s24 = scalar_select %p646_p11, 1, 0 }
  0x13   : > { %s808_s25 = scalar_select %p650_p12, 1, 0 }
  0x14   : > { %s659_s4 = scalar_lea.hbm %s801_s1, %s376_s27  ;;  %s156_s5 = scalar_lea.vmem [#allocation2], %s375_s28 }
  0x15   : > { %s163_s6 = sshll.u32 %s156_s5, 4  ;;  %p663_p13 = pnand %p407_p10, %p635_p5  ;;  %s667_s6 = int_to_ptr.vmem [resolvable:$true] %s163_s6 }
  0x16   : > { %s153_s8 = scalar_lea.sflag [#allocation3], %s152_s26  ;;  %s442_s9 = scalar_lea.hbm %s659_s4, 128 }
  0x17   : > { %p443_p2 = scmp.ne.s32.totalorder %s659_s4, %s442_s9  ;;  %p444_p3 = pneg %p663_p13 }
  0x18   : > { %s447_s17 = scalar_lea.hbm %s801_s1, 256  ;;  %p448_p5 = scmp.lt.u32.totalorder %s659_s4, %s801_s1 }
  0x19   : > { %p445_p4 = pnand %p444_p3, %p443_p2  ;;  %p449_p8 = scmp.lt.u32.totalorder %s447_s17, %s442_s9 }
  0x1a   : > { %p451_p9 = scmp.lt.u32.totalorder %s442_s9, %s659_s4 }
  0x1b   : > { %p446_p7 = pneg %p445_p4  ;;  %p450_p10 = por %p449_p8, %p448_p5 }
  0x1d   : > { %p452_p0 = por %p451_p9, %p450_p10 }
  0x1f   : > { %p453_p1 = pnand %p452_p0, %p446_p7 }
  0x21   : > { %456 = shalt.err (!%p453_p1)
}
  0x22   : > { %s457_s22 = scalar_lea.vmem %s667_s6, 128  ;;  %s572_s26 = smov [#allocation2]  }
  0x23   : > { %p458_p2 = scmp.ne.s32.totalorder %s667_s6, %s457_s22  ;;  %s462_s27 = sshll.u32 %s572_s26, 4  ;;  %s463_s27 = int_to_ptr.vmem [resolvable:$false] %s462_s27 }
  0x24   : > { %s464_s28 = scalar_lea.vmem %s463_s27, 256  ;;  %p465_p11 = scmp.lt.s32.totalorder %s667_s6, %s463_s27 }
  0x25   : > { %p460_p4 = pnand %p458_p2, %p444_p3  ;;  %p466_p5 = scmp.lt.s32.totalorder %s464_s28, %s457_s22 }
  0x27   : > { %p461_p12 = pneg %p460_p4  ;;  %p467_p8 = por %p466_p5, %p465_p11 }
  0x29   : > { %p468_p9 = pnand %p467_p8, %p461_p12 }
  0x2b   : > { %471 = shalt.err (!%p468_p9)
}
  0x2c   : > { %399 = dma.hbm_to_vmem [thread:$0]  (!%p663_p13), %s659_s4, 128, %s667_s6, %s153_s8  }
  0x2d   : > { %p810_p0 = scmp.lt.s32.totalorder %s570_s15, 3  ;;  %p811_p1 = scmp.ge.s32.totalorder %s570_s15, 1 }
  0x2f   : > { %p169_p3 = pnand %p811_p1, %p810_p0 }
  0x30   : > { %s701_s29 = sand.u32 (!%p169_p3), 1, %s562_s13  }
  0x31   : > { %172 = sbr.rel (%p169_p3) target bundleno = 110 (0x6e), region = 28  ;;  %s704_s30 = sshll.u32 (!%p169_p3), %s701_s29, 3 }
  0x32   : > { %s175_s5 = scalar_lea.sflag (!%p169_p3), [#allocation3], %s701_s29  ;;  %s178_s7 = scalar_lea.vmem (!%p169_p3), [#allocation2], %s704_s30 }
  0x38   : > { %545 = dma.done.wait (%p639_p6), %s175_s5, 128  }
  0x39   : > { %547 = vsyncadd (%p639_p6), %s175_s5, 4294967168  ;;  %p210_p11 = scmp.lt.s32.totalorder %s617_s16, 1  ;;  %s202_s11 = scalar_lea.vmem [#allocation5], %s704_s30  ;;  %v215_v1 = vld [vmem:[%s178_s7] sm:$0xff]  ;;  %v573_v5 = vmov 0.0  }
  0x3a   : > { %s245_s17 = sshll.u32 %s202_s11, 4  ;;  %s386_s23 = sshll.u32 %s617_s16, 7  ;;  %v221_v3 = vmul.f32 0.9, %v215_v1  ;;  %s722_s17 = int_to_ptr.vmem [resolvable:$true] %s245_s17 }
  0x3b   : > { %s211_s4 = scalar_select %p210_p11, %s617_s16, 1 }
  0x3c   : > { %s209_s19 = scalar_lea.vmem [#allocation6], %s704_s30  ;;  %s727_s27 = scalar_lea.hbm %s802_s2, %s386_s23 }
  0x3d   : > { %s381_s6 = sshll.u32 %s211_s4, 3  ;;  %s258_s20 = sshll.u32 %s209_s19, 4  ;;  %s729_s20 = int_to_ptr.vmem [resolvable:$true] %s258_s20 }
  0x3e   : > { %s213_s10 = scalar_lea.vmem %s800_s0, %s381_s6  ;;  %s734_s5 = scalar_lea.hbm %s803_s3, %s386_s23 }
  0x3f   : > { %v214_v0 = vld [vmem:[%s213_s10] sm:$0xff]  ;;  %s227_s7 = scalar_lea.sflag [#allocation4], %s701_s29  ;;  %s472_s4 = scalar_lea.vmem %s722_s17, 128 }
  0x40   : > { %v382_v2 = vadd.f32 -1.0, %v214_v0  ;;  %v222_v4 = vadd.f32 %v221_v3, %v214_v0  ;;  %p473_p6 = scmp.ne.s32.totalorder %s722_s17, %s472_s4  ;;  %p812_p12 = scmp.ne.s32.totalorder %s807_s24, 0 }
  0x41   : > { %s574_s6 = smov [#allocation5]  }
  0x42   : > { %vm217_vm0 = vcmp.gt.f32.partialorder %v382_v2, 0.0  ;;  %p474_p13 = pnand %p473_p6, %p812_p12  ;;  %s476_s8 = sshll.u32 %s574_s6, 4  ;;  %s477_s8 = int_to_ptr.vmem [resolvable:$false] %s476_s8 }
  0x43   : > { %v383_v6 = vsel %vm217_vm0, 1.0, %v573_v5  ;;  %s478_s9 = scalar_lea.vmem %s477_s8, 256  ;;  %p479_p10 = scmp.lt.s32.totalorder %s722_s17, %s477_s8 }
  0x44   : > { %220 = vst [vmem:[%s202_s11] sm:$0xff] %v383_v6  ;;  %v224_v7 = vsub.f32 %v222_v4, %v383_v6  ;;  %p475_p7 = pneg %p474_p13  ;;  %p480_p2 = scmp.lt.s32.totalorder %s478_s9, %s472_s4 }
  0x46   : > { %p481_p4 = por %p480_p2, %p479_p10 }
  0x48   : > { %p482_p5 = pnand %p481_p4, %p475_p7 }
  0x4a   : > { %485 = shalt.err (!%p482_p5)
}
  0x4b   : > { %s486_s10 = scalar_lea.hbm %s727_s27, 128  ;;  %s490_s22 = scalar_lea.hbm %s802_s2, 256 }
  0x4c   : > { %p487_p8 = scmp.ne.s32.totalorder %s727_s27, %s486_s10  ;;  %p491_p1 = scmp.lt.u32.totalorder %s727_s27, %s802_s2 }
  0x4d   : > { %p492_p3 = scmp.lt.u32.totalorder %s490_s22, %s486_s10  ;;  %p494_p6 = scmp.lt.u32.totalorder %s486_s10, %s727_s27 }
  0x4e   : > { %p488_p9 = pnand %p487_p8, %p812_p12 }
  0x4f   : > { %p493_p11 = por %p492_p3, %p491_p1 }
  0x50   : > { %p489_p0 = pneg %p488_p9 }
  0x51   : > { %p495_p13 = por %p494_p6, %p493_p11 }
  0x53   : > { %p496_p7 = pnand %p495_p13, %p489_p0 }
  0x55   : > { %499 = shalt.err (!%p496_p7)
}
  0x56   : > { %392 = dma.vmem_to_hbm [thread:$0]  (%p812_p12), %s722_s17, 128, %s727_s27, %s227_s7   ;;  %225 = vst [vmem:[%s209_s19] sm:$0xff] %v224_v7 }
  0x57   : > { %s232_s28 = scalar_lea.sflag [#allocation7], %s701_s29  ;;  %s500_s4 = scalar_lea.vmem %s729_s20, 128 }
  0x58   : > { %p501_p10 = scmp.ne.s32.totalorder %s729_s20, %s500_s4  ;;  %s575_s6 = smov [#allocation6]  }
  0x59   : > { %s504_s8 = sshll.u32 %s575_s6, 4  ;;  %s505_s8 = int_to_ptr.vmem [resolvable:$false] %s504_s8 }
  0x5a   : > { %p502_p2 = pnand %p501_p10, %p812_p12  ;;  %s506_s9 = scalar_lea.vmem %s505_s8, 256 }
  0x5b   : > { %p507_p5 = scmp.lt.s32.totalorder %s729_s20, %s505_s8  ;;  %p508_p8 = scmp.lt.s32.totalorder %s506_s9, %s500_s4 }
  0x5c   : > { %p503_p4 = pneg %p502_p2 }
  0x5d   : > { %p509_p9 = por %p508_p8, %p507_p5 }
  0x5f   : > { %p510_p0 = pnand %p509_p9, %p503_p4 }
  0x61   : > { %513 = shalt.err (!%p510_p0)
}
  0x62   : > { %s514_s29 = scalar_lea.hbm %s734_s5, 128  ;;  %s518_s19 = scalar_lea.hbm %s803_s3, 256 }
  0x63   : > { %p515_p1 = scmp.ne.s32.totalorder %s734_s5, %s514_s29  ;;  %p519_p6 = scmp.lt.u32.totalorder %s734_s5, %s803_s3 }
  0x64   : > { %p520_p13 = scmp.lt.u32.totalorder %s518_s19, %s514_s29  ;;  %p522_p10 = scmp.lt.u32.totalorder %s514_s29, %s734_s5 }
  0x65   : > { %p516_p3 = pnand %p515_p1, %p812_p12 }
  0x66   : > { %p521_p7 = por %p520_p13, %p519_p6 }
  0x67   : > { %p517_p11 = pneg %p516_p3 }
  0x68   : > { %p523_p2 = por %p522_p10, %p521_p7 }
  0x6a   : > { %p524_p4 = pnand %p523_p2, %p517_p11 }
  0x6c   : > { %527 = shalt.err (!%p524_p4)
}
  0x6d   : > { %393 = dma.vmem_to_hbm [thread:$0]  (%p812_p12), %s729_s20, 128, %s734_s5, %s232_s28  }
  0x6e PF: > { %s270_s10 = sand.u32 1, %s558_s12   ;;  %p813_p5 = scmp.ne.s32.totalorder %s808_s25, 0 }
  0x6f   : > { %p814_p8 = scmp.ge.s32.totalorder %s570_s15, 2  ;;  %s271_s11 = scalar_lea.sflag [#allocation4], %s270_s10 }
  0x71   : > { %p401_p9 = pnand %p814_p8, %p813_p5 }
  0x73   : > { %549 = dma.done.wait (!%p401_p9), %s271_s11, 128  }
  0x74   : > { %551 = vsyncadd (!%p401_p9), %s271_s11, 4294967168  ;;  %s280_s23 = scalar_lea.sflag [#allocation7], %s270_s10 }
  0x75   : > { %553 = dma.done.wait (!%p401_p9), %s280_s23, 128  }
  0x76   : > { %555 = vsyncadd (!%p401_p9), %s280_s23, 4294967168  ;;  %p20_p12 = scmp.ge.s32.totalorder %s621_s18, 4   ;;  %s815_s12 = smov %s562_s13 }
  0x77   : > { %s816_s13 = smov %s566_s14  ;;  %s817_s14 = smov %s633_s21 }
  0x78   : > { %s818_s15 = smov %s621_s18  ;;  %22 = sbr.rel (!%p20_p12) target bundleno = 7 (0x7), region = 93 }
  0x7f   :  { %285 = vsyncpa [#allocation3], 1 }
  0x80   :  { %287 = vsyncpa [#allocation3 + $0x1], 1 }
  0x81   :  { %288 = vsyncpa [#allocation4], 1 }
  0x82   :  { %290 = vsyncpa [#allocation4 + $0x1], 1 }
  0x83   :  { %291 = vsyncpa [#allocation7], 1 }
  0x84   :  { %293 = vsyncpa [#allocation7 + $0x1], 1 }

</bundles_post_ra>
